<compile_context>
chip_gen: v7x
topology: tpu7x:2x2x1
jax: 0.10.0
libtpu: 0.0.40
codegen_flags: <defaults>
</compile_context>

<pallas_src>
import functools

import jax
import jax.numpy as jnp
from jax.experimental import pallas as pl
from jax.experimental.pallas import tpu as pltpu


def _round_up(n, m):
    return ((n + m - 1) // m) * m


def _mlp_kernel(x_ref, w1_ref, b1_ref, w2_ref, b2_ref, o_ref):
    # x_ref:  (tb, D_in) f32 | w1_ref: (D_in, H) bf16 | b1_ref: (1, H) f32
    # w2_ref: (H, H)   bf16  | b2_ref: (1, H)    f32  | o_ref:  (tb, H) f32
    x = x_ref[...].astype(w1_ref.dtype)                 # in-VMEM cast, MXU-hidden
    h = jnp.dot(x, w1_ref[...], preferred_element_type=jnp.float32)
    h = jnp.maximum(h + b1_ref[...], 0.0)               # bias + ReLU in f32
    o = jnp.dot(h.astype(w2_ref.dtype), w2_ref[...],
                preferred_element_type=jnp.float32)
    o_ref[...] = (o + b2_ref[...]).astype(o_ref.dtype)


@functools.partial(jax.jit, static_argnames=("block_b", "single_buffer_weights"))
def _forward_impl(x, w1, b1, w2, b2, *, block_b, single_buffer_weights):
    B, D_in = x.shape
    H = w1.shape[1]
    out_dtype = x.dtype   # keep f32 to match the PyTorch TargetNet / RND predictor

    # Batch tile: multiple of 8 (f32 sublane rows). If the whole batch would be
    # swallowed by one tile, split into two grid steps so the "parallel" axis
    # actually spans both v7x TensorCores.
    tb = min(block_b, _round_up(B, 8))
    if B > 8 and pl.cdiv(B, tb) < 2:
        tb = max(8, _round_up(pl.cdiv(B, 2), 8))
    grid = (pl.cdiv(B, tb),)

    # Constant-index-map operands don't need double-buffering.
    resident_kw = dict(pipeline_mode=pl.Buffered(1)) if single_buffer_weights else {}

    flops = 2 * B * (D_in * H + H * H)
    bytes_accessed = (
        x.size * x.dtype.itemsize
        + w1.size * w1.dtype.itemsize
        + w2.size * w2.dtype.itemsize
        + (b1.size + b2.size) * 4
        + B * H * jnp.dtype(out_dtype).itemsize
    )

    return pl.pallas_call(
        _mlp_kernel,
        out_shape=jax.ShapeDtypeStruct((B, H), out_dtype),
        grid_spec=pltpu.PrefetchScalarGridSpec(
            num_scalar_prefetch=0,
            grid=grid,
            in_specs=[
                pl.BlockSpec((tb, D_in), lambda i: (i, 0)),                 # x tile (f32)
                pl.BlockSpec((D_in, H), lambda i: (0, 0), **resident_kw),   # W1 (resident)
                pl.BlockSpec((1, H), lambda i: (0, 0), **resident_kw),      # b1
                pl.BlockSpec((H, H), lambda i: (0, 0), **resident_kw),      # W2 (resident)
                pl.BlockSpec((1, H), lambda i: (0, 0), **resident_kw),      # b2
            ],
            out_specs=pl.BlockSpec((tb, H), lambda i: (i, 0)),
        ),
        compiler_params=pltpu.CompilerParams(
            dimension_semantics=("parallel",),      # batch axis -> megacore sharding
            vmem_limit_bytes=48 * 1024 * 1024,      # headroom for 512-1024 row tiles
        ),
        cost_estimate=pl.CostEstimate(
            flops=flops, transcendentals=0, bytes_accessed=bytes_accessed),
    )(x, w1, b1, w2, b2)


_SINGLE_BUFFER_OK = hasattr(pl, "Buffered")


def target_net_forward(x, w1, b1, w2, b2, *, block_b=512):
    """x: (B, D_in) f32; (w1, b1, w2, b2) as returned by prepare_params()."""
    global _SINGLE_BUFFER_OK
    if _SINGLE_BUFFER_OK:
        try:
            return _forward_impl(x, w1, b1, w2, b2, block_b=block_b,
                                 single_buffer_weights=True)
        except Exception:
            _SINGLE_BUFFER_OK = False   # fall back to default double-buffering
    return _forward_impl(x, w1, b1, w2, b2, block_b=block_b,
                         single_buffer_weights=False)


def prepare_params(w1, b1, w2, b2, compute_dtype=jnp.bfloat16):
    """One-time cast of the frozen TargetNet params to kernel dtypes."""
    H = w1.shape[1]
    return (jnp.asarray(w1, compute_dtype),
            jnp.asarray(b1, jnp.float32).reshape(1, H),
            jnp.asarray(w2, compute_dtype),
            jnp.asarray(b2, jnp.float32).reshape(1, H))


def init_params(key, input_dim, hidden_dim, dtype=jnp.float32):
    """Deterministic synthetic init (PyTorch-Linear-style uniform bounds)."""
    k1, k2, k3, k4 = jax.random.split(key, 4)
    bound1 = 1.0 / (input_dim ** 0.5)
    bound2 = 1.0 / (hidden_dim ** 0.5)
    # stored already transposed to (in, out) for x @ W
    w1 = jax.random.uniform(k1, (input_dim, hidden_dim), dtype, -bound1, bound1)
    b1 = jax.random.uniform(k2, (hidden_dim,), dtype, -bound1, bound1)
    w2 = jax.random.uniform(k3, (hidden_dim, hidden_dim), dtype, -bound2, bound2)
    b2 = jax.random.uniform(k4, (hidden_dim,), dtype, -bound2, bound2)
    return w1, b1, w2, b2


if __name__ == "__main__":
    # Small shapes consistent with the module (full size: input_dim=1536,
    # hidden_dim=512). BATCH=24 exercises the >=2-step grid rule (tb becomes
    # 16 -> 2 grid steps) and a partial, masked tail block (rows 16..23).
    BATCH, INPUT_DIM, HIDDEN_DIM = 24, 256, 128

    key = jax.random.PRNGKey(0)
    kx, kp = jax.random.split(key)
    x = jax.random.normal(kx, (BATCH, INPUT_DIM), jnp.float32)
    w1, b1, w2, b2 = init_params(kp, INPUT_DIM, HIDDEN_DIM)
    w1c, b1c, w2c, b2c = prepare_params(w1, b1, w2, b2)   # one-time cast

    out = target_net_forward(x, w1c, b1c, w2c, b2c)
    out = jax.block_until_ready(out)
    assert out.shape == (BATCH, HIDDEN_DIM)
    assert bool(jnp.all(jnp.isfinite(out)))

    # Reference matching the kernel's bf16-matmul / f32-accumulate arithmetic.
    xb = x.astype(jnp.bfloat16)
    h_ref = jnp.maximum(
        jnp.dot(xb, w1c, preferred_element_type=jnp.float32) + b1c, 0.0)
    ref = jnp.dot(h_ref.astype(jnp.bfloat16), w2c,
                  preferred_element_type=jnp.float32) + b2c
    assert jnp.allclose(out, ref, atol=2e-3, rtol=2e-3)

    # Loose sanity check against full-f32 math (bf16 rounding tolerance).
    ref32 = jnp.maximum(x @ w1 + b1, 0.0) @ w2 + b2
    assert jnp.allclose(out, ref32, atol=5e-2, rtol=5e-2)

    print("KERNEL_OK")
</pallas_src>

<mosaic_0001>
module attributes {stable_mosaic.version = 11 : i64} {
  func.func @_mlp_kernel(%arg0: i32, %arg1: memref<16x256xf32, #tpu.memory_space<vmem>>, %arg2: memref<256x128xbf16, #tpu.memory_space<vmem>>, %arg3: memref<1x128xf32, #tpu.memory_space<vmem>>, %arg4: memref<128x128xbf16, #tpu.memory_space<vmem>>, %arg5: memref<1x128xf32, #tpu.memory_space<vmem>>, %arg6: memref<16x128xf32, #tpu.memory_space<vmem>>) attributes {dimension_semantics = [#tpu.dimension_semantics<parallel>], iteration_bounds = array<i64: 2>, scalar_prefetch = 0 : i64, scratch_operands = 0 : i64, tpu.core_type = #tpu.core_type<tc>, window_params = [{transform_indices = @transform_0, window_bounds = array<i64: 16, 256>}, {pipeline_mode = #tpu.pipeline_mode<synchronous>, transform_indices = @transform_1, window_bounds = array<i64: 256, 128>}, {pipeline_mode = #tpu.pipeline_mode<synchronous>, transform_indices = @transform_2, window_bounds = array<i64: 1, 128>}, {pipeline_mode = #tpu.pipeline_mode<synchronous>, transform_indices = @transform_3, window_bounds = array<i64: 128, 128>}, {pipeline_mode = #tpu.pipeline_mode<synchronous>, transform_indices = @transform_4, window_bounds = array<i64: 1, 128>}, {transform_indices = @transform_5, window_bounds = array<i64: 16, 128>}]} {
    %c0 = arith.constant 0 : index
    %c0_0 = arith.constant 0 : index
    %0 = vector.load %arg1[%c0, %c0_0] : memref<16x256xf32, #tpu.memory_space<vmem>>, vector<16x256xf32>
    %1 = arith.truncf %0 : vector<16x256xf32> to vector<16x256xbf16>
    %c0_1 = arith.constant 0 : index
    %c0_2 = arith.constant 0 : index
    %2 = vector.load %arg2[%c0_1, %c0_2] : memref<256x128xbf16, #tpu.memory_space<vmem>>, vector<256x128xbf16>
    %cst = arith.constant dense<0.000000e+00> : vector<16x128xf32>
    %3 = tpu.matmul %1, %2, %cst {dimension_numbers = #tpu.dot_dimension_numbers<[1], [0], [0], [1], [0, 0, 1, 1], [], []>} : vector<16x256xbf16>, vector<256x128xbf16>, vector<16x128xf32> -> vector<16x128xf32>
    %c0_3 = arith.constant 0 : index
    %c0_4 = arith.constant 0 : index
    %4 = vector.load %arg3[%c0_3, %c0_4] : memref<1x128xf32, #tpu.memory_space<vmem>>, vector<1x128xf32>
    %5 = vector.broadcast %4 : vector<1x128xf32> to vector<16x128xf32>
    %6 = arith.addf %3, %5 : vector<16x128xf32>
    %cst_5 = arith.constant 0.000000e+00 : f32
    %7 = vector.broadcast %cst_5 : f32 to vector<16x128xf32>
    %8 = arith.maximumf %6, %7 : vector<16x128xf32>
    %9 = arith.truncf %8 : vector<16x128xf32> to vector<16x128xbf16>
    %c0_6 = arith.constant 0 : index
    %c0_7 = arith.constant 0 : index
    %10 = vector.load %arg4[%c0_6, %c0_7] : memref<128x128xbf16, #tpu.memory_space<vmem>>, vector<128x128xbf16>
    %cst_8 = arith.constant dense<0.000000e+00> : vector<16x128xf32>
    %11 = tpu.matmul %9, %10, %cst_8 {dimension_numbers = #tpu.dot_dimension_numbers<[1], [0], [0], [1], [0, 0, 1, 1], [], []>} : vector<16x128xbf16>, vector<128x128xbf16>, vector<16x128xf32> -> vector<16x128xf32>
    %c0_9 = arith.constant 0 : index
    %c0_10 = arith.constant 0 : index
    %12 = vector.load %arg5[%c0_9, %c0_10] : memref<1x128xf32, #tpu.memory_space<vmem>>, vector<1x128xf32>
    %13 = vector.broadcast %12 : vector<1x128xf32> to vector<16x128xf32>
    %14 = arith.addf %11, %13 : vector<16x128xf32>
    %c0_11 = arith.constant 0 : index
    %c0_12 = arith.constant 0 : index
    %15 = vector.load %arg6[%c0_11, %c0_12] : memref<16x128xf32, #tpu.memory_space<vmem>>, vector<16x128xf32>
    tpu.vector_store %arg6[%c0_11, %c0_12], %14 {strides = array<i32>} : memref<16x128xf32, #tpu.memory_space<vmem>>, vector<16x128xf32>,
    return
  }
  func.func @transform_0(%arg0: i32) -> (i32, i32) {
    %c0_i32 = arith.constant 0 : i32
    %c0_i32_0 = arith.constant 0 : i32
    return %arg0, %c0_i32 : i32, i32
  }
  func.func @transform_1(%arg0: i32) -> (i32, i32) {
    %c0_i32 = arith.constant 0 : i32
    %c0_i32_0 = arith.constant 0 : i32
    %c0_i32_1 = arith.constant 0 : i32
    return %c0_i32, %c0_i32_0 : i32, i32
  }
  func.func @transform_2(%arg0: i32) -> (i32, i32) {
    %c0_i32 = arith.constant 0 : i32
    %c0_i32_0 = arith.constant 0 : i32
    %c0_i32_1 = arith.constant 0 : i32
    return %c0_i32, %c0_i32_0 : i32, i32
  }
  func.func @transform_3(%arg0: i32) -> (i32, i32) {
    %c0_i32 = arith.constant 0 : i32
    %c0_i32_0 = arith.constant 0 : i32
    %c0_i32_1 = arith.constant 0 : i32
    return %c0_i32, %c0_i32_0 : i32, i32
  }
  func.func @transform_4(%arg0: i32) -> (i32, i32) {
    %c0_i32 = arith.constant 0 : i32
    %c0_i32_0 = arith.constant 0 : i32
    %c0_i32_1 = arith.constant 0 : i32
    return %c0_i32, %c0_i32_0 : i32, i32
  }
  func.func @transform_5(%arg0: i32) -> (i32, i32) {
    %c0_i32 = arith.constant 0 : i32
    %c0_i32_0 = arith.constant 0 : i32
    return %arg0, %c0_i32 : i32, i32
  }
}

module attributes {stable_mosaic.version = 11 : i64} {
  func.func @_mlp_kernel(%arg0: i32, %arg1: memref<16x256xf32, #tpu.memory_space<vmem>>, %arg2: memref<256x128xbf16, #tpu.memory_space<vmem>>, %arg3: memref<1x128xf32, #tpu.memory_space<vmem>>, %arg4: memref<128x128xbf16, #tpu.memory_space<vmem>>, %arg5: memref<1x128xf32, #tpu.memory_space<vmem>>, %arg6: memref<16x128xf32, #tpu.memory_space<vmem>>) attributes {dimension_semantics = [#tpu.dimension_semantics<parallel>], iteration_bounds = array<i64: 2>, scalar_prefetch = 0 : i64, scratch_operands = 0 : i64, tpu.core_type = #tpu.core_type<tc>, window_params = [{transform_indices = @transform_0, window_bounds = array<i64: 16, 256>}, {pipeline_mode = #tpu.pipeline_mode<synchronous>, transform_indices = @transform_1, window_bounds = array<i64: 256, 128>}, {pipeline_mode = #tpu.pipeline_mode<synchronous>, transform_indices = @transform_2, window_bounds = array<i64: 1, 128>}, {pipeline_mode = #tpu.pipeline_mode<synchronous>, transform_indices = @transform_3, window_bounds = array<i64: 128, 128>}, {pipeline_mode = #tpu.pipeline_mode<synchronous>, transform_indices = @transform_4, window_bounds = array<i64: 1, 128>}, {transform_indices = @transform_5, window_bounds = array<i64: 16, 128>}]} {
    %c0 = arith.constant 0 : index
    %c0_0 = arith.constant 0 : index
    %0 = vector.load %arg1[%c0, %c0_0] : memref<16x256xf32, #tpu.memory_space<vmem>>, vector<16x256xf32>
    %1 = arith.truncf %0 : vector<16x256xf32> to vector<16x256xbf16>
    %c0_1 = arith.constant 0 : index
    %c0_2 = arith.constant 0 : index
    %2 = vector.load %arg2[%c0_1, %c0_2] : memref<256x128xbf16, #tpu.memory_space<vmem>>, vector<256x128xbf16>
    %cst = arith.constant dense<0.000000e+00> : vector<16x128xf32>
    %3 = tpu.matmul %1, %2, %cst {dimension_numbers = #tpu.dot_dimension_numbers<[1], [0], [0], [1], [0, 0, 1, 1], [], []>} : vector<16x256xbf16>, vector<256x128xbf16>, vector<16x128xf32> -> vector<16x128xf32>
    %c0_3 = arith.constant 0 : index
    %c0_4 = arith.constant 0 : index
    %4 = vector.load %arg3[%c0_3, %c0_4] : memref<1x128xf32, #tpu.memory_space<vmem>>, vector<1x128xf32>
    %5 = vector.broadcast %4 : vector<1x128xf32> to vector<16x128xf32>
    %6 = arith.addf %3, %5 : vector<16x128xf32>
    %cst_5 = arith.constant 0.000000e+00 : f32
    %7 = vector.broadcast %cst_5 : f32 to vector<16x128xf32>
    %8 = arith.maximumf %6, %7 : vector<16x128xf32>
    %9 = arith.truncf %8 : vector<16x128xf32> to vector<16x128xbf16>
    %c0_6 = arith.constant 0 : index
    %c0_7 = arith.constant 0 : index
    %10 = vector.load %arg4[%c0_6, %c0_7] : memref<128x128xbf16, #tpu.memory_space<vmem>>, vector<128x128xbf16>
    %cst_8 = arith.constant dense<0.000000e+00> : vector<16x128xf32>
    %11 = tpu.matmul %9, %10, %cst_8 {dimension_numbers = #tpu.dot_dimension_numbers<[1], [0], [0], [1], [0, 0, 1, 1], [], []>} : vector<16x128xbf16>, vector<128x128xbf16>, vector<16x128xf32> -> vector<16x128xf32>
    %c0_9 = arith.constant 0 : index
    %c0_10 = arith.constant 0 : index
    %12 = vector.load %arg5[%c0_9, %c0_10] : memref<1x128xf32, #tpu.memory_space<vmem>>, vector<1x128xf32>
    %13 = vector.broadcast %12 : vector<1x128xf32> to vector<16x128xf32>
    %14 = arith.addf %11, %13 : vector<16x128xf32>
    %c0_11 = arith.constant 0 : index
    %c0_12 = arith.constant 0 : index
    %15 = vector.load %arg6[%c0_11, %c0_12] : memref<16x128xf32, #tpu.memory_space<vmem>>, vector<16x128xf32>
    tpu.vector_store %arg6[%c0_11, %c0_12], %14 {strides = array<i32>} : memref<16x128xf32, #tpu.memory_space<vmem>>, vector<16x128xf32>,
    return
  }
  func.func @transform_0(%arg0: i32) -> (i32, i32) {
    %c0_i32 = arith.constant 0 : i32
    %c0_i32_0 = arith.constant 0 : i32
    return %arg0, %c0_i32 : i32, i32
  }
  func.func @transform_1(%arg0: i32) -> (i32, i32) {
    %c0_i32 = arith.constant 0 : i32
    %c0_i32_0 = arith.constant 0 : i32
    %c0_i32_1 = arith.constant 0 : i32
    return %c0_i32, %c0_i32_0 : i32, i32
  }
  func.func @transform_2(%arg0: i32) -> (i32, i32) {
    %c0_i32 = arith.constant 0 : i32
    %c0_i32_0 = arith.constant 0 : i32
    %c0_i32_1 = arith.constant 0 : i32
    return %c0_i32, %c0_i32_0 : i32, i32
  }
  func.func @transform_3(%arg0: i32) -> (i32, i32) {
    %c0_i32 = arith.constant 0 : i32
    %c0_i32_0 = arith.constant 0 : i32
    %c0_i32_1 = arith.constant 0 : i32
    return %c0_i32, %c0_i32_0 : i32, i32
  }
  func.func @transform_4(%arg0: i32) -> (i32, i32) {
    %c0_i32 = arith.constant 0 : i32
    %c0_i32_0 = arith.constant 0 : i32
    %c0_i32_1 = arith.constant 0 : i32
    return %c0_i32, %c0_i32_0 : i32, i32
  }
  func.func @transform_5(%arg0: i32) -> (i32, i32) {
    %c0_i32 = arith.constant 0 : i32
    %c0_i32_0 = arith.constant 0 : i32
    return %arg0, %c0_i32 : i32, i32
  }
}

</mosaic_0001>

<bundles_post_ra>
// kernel: _forward_impl.1
= control target key start
LH: loop header
LB: loop body
LE: loop exit
PB: predicated region body
PF: predicated region fallthrough
CT: control target
= control target key end

     0   :  { %10 = vsyncpa [#allocation3], 0  ;;  %s1369_s0 = inlined_call_operand.hbm [shape: f32[24,256], index: 0, kind: input, shape index: {}]   ;;  %s1370_s1 = inlined_call_operand.hbm [shape: bf16[256,128], index: 1, kind: input, shape index: {}]   ;;  %s1371_s2 = inlined_call_operand.vmem [shape: f32[1,128], index: 2, kind: input, shape index: {}]   ;;  %s1372_s3 = inlined_call_operand.hbm [shape: bf16[128,128], index: 3, kind: input, shape index: {}]   ;;  %s1373_s4 = inlined_call_operand.vmem [shape: f32[1,128], index: 4, kind: input, shape index: {}]   ;;  %s1374_s5 = inlined_call_operand.hbm [shape: f32[24,128], index: 5, kind: output, shape index: {}]  }
   0x1   :  { %12 = vsyncpa [#allocation3 + $0x1], 0 }
   0x2   :  { %13 = vsyncpa [#allocation6], 0 }
   0x3   :  { %14 = vsyncpa [#allocation4], 0 }
   0x4   :  { %16 = vsyncpa [#allocation4 + $0x1], 0  ;;  %s1102_s18 = smov 0   ;;  %s1104_s19 = smov 0  }
   0x5   :  { %s1106_s20 = smov 0   ;;  %s1108_s21 = smov 0  }
   0x6 LB: > { %s1123_s22 = sadd.s32 4294967295, %s1058_s21   ;;  %s703_s23 = sadd.s32 4294967294, %s1058_s21   ;;  %s1058_s21 = sphi %s1108_s21, %s1396_s21   ;;  %s1054_s20 = sphi %s1106_s20, %s1395_s20   ;;  %s1050_s19 = sphi %s1104_s19, %s1394_s19   ;;  %s1046_s18 = sphi %s1102_s18, %s1393_s18  }
   0x7   : > { %s1127_s24 = sadd.s32 1, %s1058_s21   ;;  %s29_s25 = sadd.s32 1, %s1054_s20 }
   0x8   : > { %s26_s26 = ssub.s32 %s1058_s21, %s1127_s24  ;;  %p36_p0 = scmp.ne.s32.totalorder %s1054_s20, %s1050_s19 }
   0x9   : > { %p27_p1 = scmp.eq.s32.totalorder %s26_s26, 0  ;;  %p37_p2 = scmp.eq.s32.totalorder %s1058_s21, 0 }
   0xa   : > { %p42_p3 = scmp.ne.s32.totalorder %s1050_s19, %s1046_s18  ;;  %p1375_p4 = scmp.eq.s32.totalorder %s1123_s22, 0 }
   0xb   : > { %s1139_s27 = scalar_select %p27_p1, %s1054_s20, %s29_s25  }
   0xc   : > { %p1141_p5 = por %p37_p2, %p36_p0  ;;  %p1147_p6 = por %p1375_p4, %p42_p3 }
   0xd   : > { %1378 = sst [smem:[#allocation12_spill]] %s1139_s27  ;;  %p150_p7 = scmp.eq.s32.totalorder %s1123_s22, 1 }
   0xe   : > { %s1379_s28 = scalar_select %p1141_p5, 1, 0 }
   0xf   : > { %s1380_s29 = scalar_select %p1147_p6, 1, 0 }
  0x10   : > { %p156_p8 = scmp.eq.s32.totalorder %s703_s23, 1  ;;  %p704_p9 = scmp.ge.s32.totalorder %s1058_s21, 1 }
  0x11   : > { %p163_p10 = scmp.lt.s32.totalorder %s1058_s21, 3  ;;  %p1154_p11 = por %p150_p7, %p36_p0 }
  0x12   : > { %p1158_p12 = por %p156_p8, %p42_p3  ;;  %s1060_s8 = smov [#allocation5]  }
  0x13   : > { %s1381_s30 = scalar_select %p1154_p11, 1, 0 }
  0x14   : > { %s1382_s6 = scalar_select %p1158_p12, 1, 0 }
  0x15   : > { %p1162_p13 = pnand %p704_p9, %p163_p10  ;;  %s175_s9 = sshll.u32 %s1060_s8, 4  ;;  %s176_s9 = int_to_ptr.vmem [resolvable:$true] %s175_s9 }
  0x16   : > { %s1061_s11 = smov [#allocation7]   ;;  %s904_s15 = scalar_lea.hbm %s1370_s1, 2048 }
  0x17   : > { %s1383_s7 = scalar_select %p1162_p13, 1, 0 }
  0x18   : > { %p822_p1 = pneg %p1162_p13  ;;  %s191_s12 = sshll.u32 %s1061_s11, 4  ;;  %s1174_s12 = int_to_ptr.vmem [resolvable:$true] %s191_s12 }
  0x19   : > { %p905_p0 = scmp.ne.s32.totalorder %s1370_s1, %s904_s15  ;;  %p911_p9 = scmp.lt.u32.totalorder %s904_s15, %s1370_s1 }
  0x1a   : > { %p1170_p2 = pnand %p822_p1, %p1375_p4 }
  0x1c   : > { %p906_p3 = pneg %p1170_p2 }
  0x1e   : > { %p907_p7 = pnand %p906_p3, %p905_p0 }
  0x20   : > { %p908_p8 = pneg %p907_p7 }
  0x22   : > { %p913_p10 = pnand %p911_p9, %p908_p8 }
  0x24   : > { %916 = shalt.err (!%p913_p10)
}
  0x25   : > { %s917_s26 = scalar_lea.vmem %s176_s9, 2048  ;;  %p925_p11 = scmp.lt.s32.totalorder %s176_s9, %s176_s9 }
  0x26   : > { %p918_p1 = scmp.ne.s32.totalorder %s176_s9, %s917_s26  ;;  %p926_p6 = scmp.lt.s32.totalorder %s917_s26, %s917_s26 }
  0x28   : > { %p920_p4 = pnand %p918_p1, %p906_p3  ;;  %p927_p13 = por %p926_p6, %p925_p11 }
  0x2a   : > { %p921_p12 = pneg %p920_p4 }
  0x2c   : > { %p928_p5 = pnand %p927_p13, %p921_p12 }
  0x2e   : > { %931 = shalt.err (!%p928_p5)
}
  0x2f   : > { %s1062_s8 = smov 64   ;;  %s1063_s11 = smov 4  }
  0x30   : > { %825 = dma.hbm_to_vmem [thread:$0]  (!%p1170_p2), %s1370_s1, 2048, %s176_s9, [#allocation6], %s1062_s8, %s1062_s8, %s1063_s11  }
  0x31   : > { %s932_s17 = scalar_lea.hbm %s1372_s3, 1024 }
  0x32   : > { %p933_p4 = scmp.ne.s32.totalorder %s1372_s3, %s932_s17  ;;  %p939_p11 = scmp.lt.u32.totalorder %s932_s17, %s1372_s3 }
  0x34   : > { %p935_p5 = pnand %p933_p4, %p906_p3 }
  0x36   : > { %p936_p6 = pneg %p935_p5 }
  0x38   : > { %p941_p12 = pnand %p939_p11, %p936_p6 }
  0x3a   : > { %944 = shalt.err (!%p941_p12)
}
  0x3b   : > { %s945_s9 = scalar_lea.vmem %s1174_s12, 1024  ;;  %p953_p8 = scmp.lt.s32.totalorder %s1174_s12, %s1174_s12 }
  0x3c   : > { %p946_p13 = scmp.ne.s32.totalorder %s1174_s12, %s945_s9  ;;  %p954_p9 = scmp.lt.s32.totalorder %s945_s9, %s945_s9 }
  0x3e   : > { %p948_p0 = pnand %p946_p13, %p906_p3  ;;  %p955_p10 = por %p954_p9, %p953_p8 }
  0x40   : > { %p949_p7 = pneg %p948_p0 }
  0x42   : > { %p956_p1 = pnand %p955_p10, %p949_p7 }
  0x44   : > { %959 = shalt.err (!%p956_p1)
}
  0x45   : > { %828 = dma.hbm_to_vmem [thread:$0]  (!%p1170_p2), %s1372_s3, 1024, %s1174_s12, [#allocation6], %s1062_s8, %s1062_s8, %s1063_s11  }
  0x46   : > { %p707_p4 = scmp.ge.s32.totalorder %s1058_s21, 2 }
  0x47   : > { %p1385_p3 = scmp.ne.s32.totalorder (!%p707_p4), %s1379_s28, 0 }
  0x48   : > { %204 = sbr.rel (%p707_p4) target bundleno = 114 (0x72), region = 32 }
  0x4f   : > { %207 = sbr.rel (!%p1385_p3) target bundleno = 114 (0x72), region = 36  ;;  %s208_s14 = sand.u32 (%p1385_p3), 1, %s1054_s20  }
  0x50   : > { %s709_s15 = sshll.u32 (%p1385_p3), %s1058_s21, 1  ;;  %s708_s16 = sshll.u32 (%p1385_p3), %s208_s14, 5 }
  0x51   : > { %s214_s17 = ssub.s32 (%p1385_p3), 3, %s709_s15  ;;  %s1233_s8 = scalar_lea.sflag (%p1385_p3), [#allocation3], %s208_s14 }
  0x52   : > { %p215_p5 = scmp.lt.s32.totalorder (%p1385_p3), %s214_s17, 2  ;;  %s212_s11 = scalar_lea.vmem (%p1385_p3), [#allocation2], %s708_s16 }
  0x56   : > { %s1398_s17 = smov (!%p215_p5, %s214_s17), 2 }
  0x57   : > { %s1230_s10 = sshll.u32 %s1398_s17, 8 }
  0x58   : > { %s220_s12 = ssub.s32 512, %s1230_s10 }
  0x59   : > { %221 = vsyncadd %s1233_s8, %s220_s12  ;;  %p712_p2 = scmp.ne.s32.totalorder %s1230_s10, 0  ;;  %s759_s28 = sshll.u32 %s1058_s21, 9 }
  0x5a   : > { %s1241_s26 = scalar_lea.hbm %s1369_s0, %s759_s28  ;;  %s227_s9 = sshll.u32 %s212_s11, 4  ;;  %s1243_s9 = int_to_ptr.vmem [resolvable:$true] %s227_s9 }
  0x5b   : > { %s960_s27 = scalar_lea.hbm %s1241_s26, %s1230_s10  ;;  %s964_s15 = scalar_lea.hbm %s1369_s0, 768 }
  0x5c   : > { %p961_p6 = scmp.ne.s32.totalorder %s1241_s26, %s960_s27  ;;  %p965_p13 = scmp.lt.u32.totalorder %s1241_s26, %s1369_s0 }
  0x5d   : > { %p966_p0 = scmp.lt.u32.totalorder %s964_s15, %s960_s27  ;;  %p968_p8 = scmp.lt.u32.totalorder %s960_s27, %s1241_s26 }
  0x5e   : > { %p962_p11 = pnand %p961_p6, %p712_p2 }
  0x5f   : > { %p967_p7 = por %p966_p0, %p965_p13 }
  0x60   : > { %p963_p12 = pneg %p962_p11 }
  0x61   : > { %p969_p9 = por %p968_p8, %p967_p7 }
  0x63   : > { %p970_p10 = pnand %p969_p9, %p963_p12 }
  0x65   : > { %973 = shalt.err (!%p970_p10)
}
  0x66   : > { %s974_s12 = scalar_lea.vmem %s1243_s9, %s1230_s10  ;;  %s1064_s11 = smov [#allocation2]  }
  0x67   : > { %p975_p1 = scmp.ne.s32.totalorder %s1243_s9, %s974_s12  ;;  %s978_s28 = sshll.u32 %s1064_s11, 4  ;;  %s979_s28 = int_to_ptr.vmem [resolvable:$false] %s978_s28 }
  0x68   : > { %s980_s23 = scalar_lea.vmem %s979_s28, 1024  ;;  %p981_p6 = scmp.lt.s32.totalorder %s1243_s9, %s979_s28 }
  0x69   : > { %p976_p3 = pnand %p975_p1, %p712_p2  ;;  %p982_p11 = scmp.lt.s32.totalorder %s980_s23, %s974_s12 }
  0x6b   : > { %p977_p5 = pneg %p976_p3  ;;  %p983_p13 = por %p982_p11, %p981_p6 }
  0x6d   : > { %p984_p0 = pnand %p983_p13, %p977_p5 }
  0x6f   : > { %987 = shalt.err (!%p984_p0)
}
  0x70   : > { %s1065_s25 = smov 256   ;;  %s1066_s27 = smov 16  }
  0x71   : > { %233 = dma.hbm_to_vmem [thread:$0]  (%p712_p2), %s1241_s26, %s1230_s10, %s1243_s9, %s1233_s8, %s1065_s25, %s1065_s25, %s1066_s27  }
  0x72 PF: > { %p1386_p12 = scmp.ne.s32.totalorder %s1383_s7, 0 }
  0x73   : > { %s1273_s13 = sand.u32 (!%p1386_p12), 1, %s1050_s19   ;;  %p1387_p7 = scmp.ne.s32.totalorder (!%p1386_p12), %s1380_s29, 0 }
  0x74   : > { %239 = sbr.rel (%p1386_p12) target bundleno = 628 (0x274), region = 40  ;;  %s718_s14 = sshll.u32 (!%p1386_p12), %s1273_s13, 5 }
  0x75   : > { %s242_s15 = scalar_lea.sflag (!%p1386_p12), [#allocation3], %s1273_s13  ;;  %s1277_s16 = scalar_lea.vmem (!%p1386_p12), [#allocation2], %s718_s14 }
  0x7b   : > { %1033 = dma.done.wait (%p1387_p7), %s242_s15, 512  }
  0x7c   : > { %1035 = vsyncadd (%p1387_p7), %s242_s15, 4294966784  ;;  %p1388_p2 = scmp.eq.s32.totalorder %s1123_s22, 0 }
  0x7e   : > { %1037 = dma.done.wait (%p1388_p2), [#allocation6], 3072   ;;  %p1389_p8 = pmov %p1388_p2 }
  0x7f   : > { %v1067_v0 = vmov 0.0   ;;  %v880_v1 = vld [vmem:[#allocation5 + $0x40] sm:$0xff]   ;;  %v882_v3 = vld [vmem:[#allocation5 + $0x48] sm:$0xff]   ;;  %v884_v5 = vld [vmem:[#allocation5 + $0x50] sm:$0xff]   ;;  %vm1068_vm0 = vmmov 0   ;;  %s721_s10 = sshll.u32 %s1273_s13, 4 }
  0x80   : > { %1039 = vsyncadd (%p1389_p8), [#allocation6], 4294964224  ;;  %792 = vmatprep.subr.bf16.mxu1 %v1067_v0  ;;  %v881_v2 = vld [vmem:[#allocation5] sm:$0xff]   ;;  %761 = vmatprep.subr.bf16.mxu0 %v880_v1  ;;  %v883_v4 = vld [vmem:[#allocation5 + $0x8] sm:$0xff]   ;;  %s279_s9 = scalar_lea.vmem [#allocation8], %s721_s10  ;;  %s592_s17 = scalar_lea.sflag [#allocation4], %s1273_s13 }
  0x81   : > { %762 = vmatpush3.bf16.msra.mxu0 %v881_v2  ;;  %v885_v6 = vld [vmem:[#allocation5 + $0x10] sm:$0xff]   ;;  %v886_v7 = vld [vmem:[#allocation5 + $0x58] sm:$0xff]   ;;  %v888_v9 = vld [vmem:[#allocation5 + $0x60] sm:$0xff]   ;;  %808 = vmatprep.mubr.msk.bf16.mxu1 %vm1068_vm0, %v1067_v0  ;;  %p1390_p9 = scmp.ne.s32.totalorder %s1381_s30, 0 }
  0x82   : > { %763 = vmatprep.subr.bf16.mxu0 %v882_v3  ;;  %v887_v8 = vld [vmem:[#allocation5 + $0x18] sm:$0xff]   ;;  %v889_v10 = vld [vmem:[#allocation5 + $0x20] sm:$0xff]   ;;  %v890_v11 = vld [vmem:[#allocation5 + $0x68] sm:$0xff]   ;;  %s749_s12 = sshll.u32 (%p1390_p9), %s1123_s22, 1 }
  0x83   : > { %v293_v12 = vld [vmem:[%s1277_s16 + $0x8] sm:$0xff]  ;;  %v295_v13 = vld [vmem:[%s1277_s16 + $0x18] sm:$0xff]  ;;  %v896_v16 = vld [vmem:[#allocation7] sm:$0xff]   ;;  %s600_s11 = ssub.s32 (%p1390_p9), 3, %s749_s12 }
  0x84   : > { %v891_v14 = vld [vmem:[#allocation5 + $0x28] sm:$0xff]   ;;  %v297_v15 = vpack.c.bf16 %v295_v13, %v293_v12  ;;  %v892_v17 = vld [vmem:[#allocation5 + $0x70] sm:$0xff]   ;;  %793 = vmatpush3.bf16.msra.mxu1 %v896_v16  ;;  %v894_v20 = vld [vmem:[#allocation5 + $0x78] sm:$0xff]   ;;  %p601_p10 = scmp.lt.s32.totalorder (%p1390_p9), %s600_s11, 2 }
  0x85   : > { %764 = vmatpush3.bf16.msra.mxu0 %v883_v4  ;;  %v897_v18 = vld [vmem:[#allocation7 + $0x8] sm:$0xff]   ;;  %794 = vmatprep.subr.bf16.mxu1 %v1067_v0  ;;  %v893_v19 = vld [vmem:[#allocation5 + $0x30] sm:$0xff]   ;;  %v895_v22 = vld [vmem:[#allocation5 + $0x38] sm:$0xff]  }
  0x86   : > { %765 = vmatprep.subr.bf16.mxu0 %v884_v5  ;;  %465 = vmatprep.mubr.bf16.mxu0 %v297_v15  ;;  %v898_v21 = vld [vmem:[#allocation7 + $0x10] sm:$0xff]   ;;  %v292_v23 = vld [vmem:[%s1277_s16] sm:$0xff]  ;;  %v899_v25 = vld [vmem:[#allocation7 + $0x18] sm:$0xff]  }
  0x87   : > { %v294_v24 = vld [vmem:[%s1277_s16 + $0x10] sm:$0xff]  ;;  %v900_v27 = vld [vmem:[#allocation7 + $0x20] sm:$0xff]   ;;  %v901_v28 = vld [vmem:[#allocation7 + $0x28] sm:$0xff]  }
  0x88   : > { %795 = vmatpush3.bf16.msra.mxu1 %v897_v18  ;;  %v296_v26 = vpack.c.bf16 %v294_v24, %v292_v23  ;;  %v902_v29 = vld [vmem:[#allocation7 + $0x30] sm:$0xff]   ;;  %v903_v30 = vld [vmem:[#allocation7 + $0x38] sm:$0xff]   ;;  %v722_v32 = vld [vmem:[%s1371_s2] ss:$0 sm:$0xff] }
  0x89   : > { %766 = vmatpush3.bf16.msra.mxu0 %v885_v6  ;;  %796 = vmatprep.subr.bf16.mxu1 %v1067_v0  ;;  %v739_v43 = vld [vmem:[%s1373_s4] ss:$0 sm:$0xff] }
  0x8a   : > { %767 = vmatprep.subr.bf16.mxu0 %v886_v7 }
  0x8c   : > { %797 = vmatpush3.bf16.msra.mxu1 %v898_v21 }
  0x8d   : > { %768 = vmatpush3.bf16.msra.mxu0 %v887_v8  ;;  %798 = vmatprep.subr.bf16.mxu1 %v1067_v0 }
  0x8e   : > { %769 = vmatprep.subr.bf16.mxu0 %v888_v9 }
  0x90   : > { %799 = vmatpush3.bf16.msra.mxu1 %v899_v25 }
  0x91   : > { %770 = vmatpush3.bf16.msra.mxu0 %v889_v10  ;;  %800 = vmatprep.subr.bf16.mxu1 %v1067_v0 }
  0x92   : > { %771 = vmatprep.subr.bf16.mxu0 %v890_v11 }
  0x94   : > { %801 = vmatpush3.bf16.msra.mxu1 %v900_v27 }
  0x95   : > { %772 = vmatpush3.bf16.msra.mxu0 %v891_v14  ;;  %802 = vmatprep.subr.bf16.mxu1 %v1067_v0 }
  0x96   : > { %773 = vmatprep.subr.bf16.mxu0 %v892_v17 }
  0x98   : > { %803 = vmatpush3.bf16.msra.mxu1 %v901_v28 }
  0x99   : > { %774 = vmatpush3.bf16.msra.mxu0 %v893_v19  ;;  %804 = vmatprep.subr.bf16.mxu1 %v1067_v0 }
  0x9a   : > { %775 = vmatprep.subr.bf16.mxu0 %v894_v20 }
  0x9c   : > { %805 = vmatpush3.bf16.msra.mxu1 %v902_v29 }
  0x9d   : > { %776 = vmatpush3.bf16.msra.mxu0 %v895_v22  ;;  %806 = vmatprep.subr.bf16.mxu1 %v1067_v0 }
  0xa0   : > { %466 = vmatmul.mubr.bf16.vlgmr.msra.gmra.mrb[0].mxu0 %v296_v26  ;;  %807 = vmatpush3.bf16.msra.mxu1 %v903_v30 }
 0x173   : > { %v777_v31 = vpop.f32.mrb[0].mxu0 }
 0x174   : > { %v778_v33 = vpop.f32.mrb[1].mxu0 }
 0x175   : > { %v779_v34 = vadd.f32 %v778_v33, %v777_v31  ;;  %v780_v35 = vpop.f32.mrb[2].mxu0 }
 0x176   : > { %v781_v36 = vpop.f32.mrb[3].mxu0 }
 0x177   : > { %v468_v37 = vadd.f32 %v779_v34, %v722_v32  ;;  %v782_v38 = vadd.f32 %v781_v36, %v780_v35 }
 0x179   : > { %v471_v39 = vadd.f32 %v782_v38, %v722_v32  ;;  %v474_v40 = vmax.f32 %v468_v37, 0.0 }
 0x17b   : > { %v475_v41 = vmax.f32 %v471_v39, 0.0 }
 0x17d   : > { %v476_v42 = vpack.c.bf16 %v475_v41, %v474_v40 }
 0x17f   : > { %809 = vmatmul.mubr.bf16.vlgmr.msra.gmra.mrb[0].mxu1 %v476_v42 }
 0x251   : > { %598 = sbr.rel (!%p1390_p9) target bundleno = 628 (0x274), region = 56 }
 0x252   : > { %v582_v44 = vpop.f32.mrb[0].mxu1 }
 0x253   : > { %v583_v45 = vadd.f32 %v739_v43, %v582_v44  ;;  %v810_v46 = vpop.f32.mrb[1].mxu1 }
 0x254   : > { %v585_v47 = vpop.f32.mrb[2].mxu1 }
 0x255   : > { %589 = vst [vmem:[%s279_s9] sm:$0xff] %v583_v45  ;;  %v586_v48 = vadd.f32 %v739_v43, %v585_v47  ;;  %v811_v49 = vpop.f32.mrb[3].mxu1 }
 0x257   : > { %590 = vst [vmem:[%s279_s9 + $0x8] sm:$0xff] %v586_v48 }
 0x258   : > { %s1400_s11 = smov (!%p601_p10, %s600_s11), 2 }
 0x259   : > { %s1311_s28 = sshll.u32 %s1400_s11, 7 }
 0x25a   : > { %s605_s23 = ssub.s32 256, %s1311_s28 }
 0x25b   : > { %606 = vsyncadd %s592_s17, %s605_s23  ;;  %p751_p1 = scmp.ne.s32.totalorder %s1311_s28, 0  ;;  %s760_s25 = sshll.u32 %s1123_s22, 8 }
 0x25c   : > { %s1321_s14 = scalar_lea.hbm %s1374_s5, %s760_s25  ;;  %s611_s15 = sshll.u32 %s279_s9, 4  ;;  %s1323_s15 = int_to_ptr.vmem [resolvable:$true] %s611_s15 }
 0x25d   : > { %s988_s16 = scalar_lea.vmem %s1323_s15, %s1311_s28  ;;  %s1069_s29 = smov [#allocation8]  }
 0x25e   : > { %p989_p3 = scmp.ne.s32.totalorder %s1323_s15, %s988_s16  ;;  %s992_s7 = sshll.u32 %s1069_s29, 4  ;;  %s993_s7 = int_to_ptr.vmem [resolvable:$false] %s992_s7 }
 0x25f   : > { %s994_s22 = scalar_lea.vmem %s993_s7, 512  ;;  %p995_p11 = scmp.lt.s32.totalorder %s1323_s15, %s993_s7 }
 0x260   : > { %p990_p5 = pnand %p989_p3, %p751_p1  ;;  %p996_p13 = scmp.lt.s32.totalorder %s994_s22, %s988_s16 }
 0x262   : > { %p991_p6 = pneg %p990_p5  ;;  %p997_p0 = por %p996_p13, %p995_p11 }
 0x264   : > { %p998_p12 = pnand %p997_p0, %p991_p6 }
 0x266   : > { %1001 = shalt.err (!%p998_p12)
}
 0x267   : > { %s1002_s10 = scalar_lea.hbm %s1321_s14, %s1311_s28  ;;  %s1006_s9 = scalar_lea.hbm %s1374_s5, 384 }
 0x268   : > { %p1003_p7 = scmp.ne.s32.totalorder %s1321_s14, %s1002_s10  ;;  %p1007_p9 = scmp.lt.u32.totalorder %s1321_s14, %s1374_s5 }
 0x269   : > { %p1008_p10 = scmp.lt.u32.totalorder %s1006_s9, %s1002_s10  ;;  %p1010_p5 = scmp.lt.u32.totalorder %s1002_s10, %s1321_s14 }
 0x26a   : > { %p1004_p2 = pnand %p1003_p7, %p751_p1 }
 0x26b   : > { %p1009_p3 = por %p1008_p10, %p1007_p9 }
 0x26c   : > { %p1005_p8 = pneg %p1004_p2 }
 0x26d   : > { %p1011_p6 = por %p1010_p5, %p1009_p3 }
 0x26f   : > { %p1012_p11 = pnand %p1011_p6, %p1005_p8 }
 0x271   : > { %1015 = shalt.err (!%p1012_p11)
}
 0x272   : > { %s1070_s23 = smov 128   ;;  %s1071_s25 = smov 8  }
 0x273   : > { %617 = dma.vmem_to_hbm [thread:$0]  (%p751_p1), %s1323_s15, %s1311_s28, %s1321_s14, %s592_s17, %s1070_s23, %s1070_s23, %s1071_s25  }
 0x274 PF: > { %s626_s30 = sand.u32 1, %s1046_s18   ;;  %p1391_p13 = scmp.ne.s32.totalorder %s1382_s6, 0 }
 0x275   : > { %s627_s27 = scalar_lea.sflag [#allocation4], %s626_s30 }
 0x276   : > { %p830_p0 = pnand %p707_p4, %p1391_p13 }
 0x278   : > { %1041 = dma.done.wait (!%p830_p0), %s627_s27, 256  }
 0x279   : > { %1043 = vsyncadd (!%p830_p0), %s627_s27, 4294967040  ;;  %s1392_s16 = sld [smem:[#allocation12_spill]]  ;;  %p19_p12 = scmp.ge.s32.totalorder %s1127_s24, 4  }
 0x27a   : > { %s1393_s18 = smov %s1050_s19  ;;  %s1394_s19 = smov %s1054_s20 }
 0x27b   : > { %s1396_s21 = smov %s1127_s24  ;;  %21 = sbr.rel (!%p19_p12) target bundleno = 6 (0x6), region = 93 }
 0x27f   : > { %s1395_s20 = smov %s1392_s16 }
 0x282   :  { %632 = vsyncpa [#allocation3], 1 }
 0x283   :  { %634 = vsyncpa [#allocation3 + $0x1], 1 }
 0x284   :  { %635 = vsyncpa [#allocation6], 1 }
 0x285   :  { %636 = vsyncpa [#allocation4], 1 }
 0x286   :  { %638 = vsyncpa [#allocation4 + $0x1], 1 }

// kernel: _forward_impl.1
= control target key start
LH: loop header
LB: loop body
LE: loop exit
PB: predicated region body
PF: predicated region fallthrough
CT: control target
= control target key end

     0   :  { %10 = vsyncpa [#allocation3], 0  ;;  %s1369_s0 = inlined_call_operand.hbm [shape: f32[24,256], index: 0, kind: input, shape index: {}]   ;;  %s1370_s1 = inlined_call_operand.hbm [shape: bf16[256,128], index: 1, kind: input, shape index: {}]   ;;  %s1371_s2 = inlined_call_operand.vmem [shape: f32[1,128], index: 2, kind: input, shape index: {}]   ;;  %s1372_s3 = inlined_call_operand.hbm [shape: bf16[128,128], index: 3, kind: input, shape index: {}]   ;;  %s1373_s4 = inlined_call_operand.vmem [shape: f32[1,128], index: 4, kind: input, shape index: {}]   ;;  %s1374_s5 = inlined_call_operand.hbm [shape: f32[24,128], index: 5, kind: output, shape index: {}]  }
   0x1   :  { %12 = vsyncpa [#allocation3 + $0x1], 0 }
   0x2   :  { %13 = vsyncpa [#allocation6], 0 }
   0x3   :  { %14 = vsyncpa [#allocation4], 0 }
   0x4   :  { %16 = vsyncpa [#allocation4 + $0x1], 0  ;;  %s1102_s18 = smov 0   ;;  %s1104_s19 = smov 0  }
   0x5   :  { %s1106_s20 = smov 0   ;;  %s1108_s21 = smov 0  }
   0x6 LB: > { %s1123_s22 = sadd.s32 4294967295, %s1058_s21   ;;  %s703_s23 = sadd.s32 4294967294, %s1058_s21   ;;  %s1058_s21 = sphi %s1108_s21, %s1396_s21   ;;  %s1054_s20 = sphi %s1106_s20, %s1395_s20   ;;  %s1050_s19 = sphi %s1104_s19, %s1394_s19   ;;  %s1046_s18 = sphi %s1102_s18, %s1393_s18  }
   0x7   : > { %s1127_s24 = sadd.s32 1, %s1058_s21   ;;  %s29_s25 = sadd.s32 1, %s1054_s20 }
   0x8   : > { %s26_s26 = ssub.s32 %s1058_s21, %s1127_s24  ;;  %p36_p0 = scmp.ne.s32.totalorder %s1054_s20, %s1050_s19 }
   0x9   : > { %p27_p1 = scmp.eq.s32.totalorder %s26_s26, 0  ;;  %p37_p2 = scmp.eq.s32.totalorder %s1058_s21, 0 }
   0xa   : > { %p42_p3 = scmp.ne.s32.totalorder %s1050_s19, %s1046_s18  ;;  %p1375_p4 = scmp.eq.s32.totalorder %s1123_s22, 0 }
   0xb   : > { %s1139_s27 = scalar_select %p27_p1, %s1054_s20, %s29_s25  }
   0xc   : > { %p1141_p5 = por %p37_p2, %p36_p0  ;;  %p1147_p6 = por %p1375_p4, %p42_p3 }
   0xd   : > { %1378 = sst [smem:[#allocation12_spill]] %s1139_s27  ;;  %p150_p7 = scmp.eq.s32.totalorder %s1123_s22, 1 }
   0xe   : > { %s1379_s28 = scalar_select %p1141_p5, 1, 0 }
   0xf   : > { %s1380_s29 = scalar_select %p1147_p6, 1, 0 }
  0x10   : > { %p156_p8 = scmp.eq.s32.totalorder %s703_s23, 1  ;;  %p704_p9 = scmp.ge.s32.totalorder %s1058_s21, 1 }
  0x11   : > { %p163_p10 = scmp.lt.s32.totalorder %s1058_s21, 3  ;;  %p1154_p11 = por %p150_p7, %p36_p0 }
  0x12   : > { %p1158_p12 = por %p156_p8, %p42_p3  ;;  %s1060_s8 = smov [#allocation5]  }
  0x13   : > { %s1381_s30 = scalar_select %p1154_p11, 1, 0 }
  0x14   : > { %s1382_s6 = scalar_select %p1158_p12, 1, 0 }
  0x15   : > { %p1162_p13 = pnand %p704_p9, %p163_p10  ;;  %s175_s9 = sshll.u32 %s1060_s8, 4  ;;  %s176_s9 = int_to_ptr.vmem [resolvable:$true] %s175_s9 }
  0x16   : > { %s1061_s11 = smov [#allocation7]   ;;  %s904_s15 = scalar_lea.hbm %s1370_s1, 2048 }
  0x17   : > { %s1383_s7 = scalar_select %p1162_p13, 1, 0 }
  0x18   : > { %p822_p1 = pneg %p1162_p13  ;;  %s191_s12 = sshll.u32 %s1061_s11, 4  ;;  %s1174_s12 = int_to_ptr.vmem [resolvable:$true] %s191_s12 }
  0x19   : > { %p905_p0 = scmp.ne.s32.totalorder %s1370_s1, %s904_s15  ;;  %p911_p9 = scmp.lt.u32.totalorder %s904_s15, %s1370_s1 }
  0x1a   : > { %p1170_p2 = pnand %p822_p1, %p1375_p4 }
  0x1c   : > { %p906_p3 = pneg %p1170_p2 }
  0x1e   : > { %p907_p7 = pnand %p906_p3, %p905_p0 }
  0x20   : > { %p908_p8 = pneg %p907_p7 }
  0x22   : > { %p913_p10 = pnand %p911_p9, %p908_p8 }
  0x24   : > { %916 = shalt.err (!%p913_p10)
}
  0x25   : > { %s917_s26 = scalar_lea.vmem %s176_s9, 2048  ;;  %p925_p11 = scmp.lt.s32.totalorder %s176_s9, %s176_s9 }
  0x26   : > { %p918_p1 = scmp.ne.s32.totalorder %s176_s9, %s917_s26  ;;  %p926_p6 = scmp.lt.s32.totalorder %s917_s26, %s917_s26 }
  0x28   : > { %p920_p4 = pnand %p918_p1, %p906_p3  ;;  %p927_p13 = por %p926_p6, %p925_p11 }
  0x2a   : > { %p921_p12 = pneg %p920_p4 }
  0x2c   : > { %p928_p5 = pnand %p927_p13, %p921_p12 }
  0x2e   : > { %931 = shalt.err (!%p928_p5)
}
  0x2f   : > { %s1062_s8 = smov 64   ;;  %s1063_s11 = smov 4  }
  0x30   : > { %825 = dma.hbm_to_vmem [thread:$0]  (!%p1170_p2), %s1370_s1, 2048, %s176_s9, [#allocation6], %s1062_s8, %s1062_s8, %s1063_s11  }
  0x31   : > { %s932_s17 = scalar_lea.hbm %s1372_s3, 1024 }
  0x32   : > { %p933_p4 = scmp.ne.s32.totalorder %s1372_s3, %s932_s17  ;;  %p939_p11 = scmp.lt.u32.totalorder %s932_s17, %s1372_s3 }
  0x34   : > { %p935_p5 = pnand %p933_p4, %p906_p3 }
  0x36   : > { %p936_p6 = pneg %p935_p5 }
  0x38   : > { %p941_p12 = pnand %p939_p11, %p936_p6 }
  0x3a   : > { %944 = shalt.err (!%p941_p12)
}
  0x3b   : > { %s945_s9 = scalar_lea.vmem %s1174_s12, 1024  ;;  %p953_p8 = scmp.lt.s32.totalorder %s1174_s12, %s1174_s12 }
  0x3c   : > { %p946_p13 = scmp.ne.s32.totalorder %s1174_s12, %s945_s9  ;;  %p954_p9 = scmp.lt.s32.totalorder %s945_s9, %s945_s9 }
  0x3e   : > { %p948_p0 = pnand %p946_p13, %p906_p3  ;;  %p955_p10 = por %p954_p9, %p953_p8 }
  0x40   : > { %p949_p7 = pneg %p948_p0 }
  0x42   : > { %p956_p1 = pnand %p955_p10, %p949_p7 }
  0x44   : > { %959 = shalt.err (!%p956_p1)
}
  0x45   : > { %828 = dma.hbm_to_vmem [thread:$0]  (!%p1170_p2), %s1372_s3, 1024, %s1174_s12, [#allocation6], %s1062_s8, %s1062_s8, %s1063_s11  }
  0x46   : > { %p707_p4 = scmp.ge.s32.totalorder %s1058_s21, 2 }
  0x47   : > { %p1385_p3 = scmp.ne.s32.totalorder (!%p707_p4), %s1379_s28, 0 }
  0x48   : > { %204 = sbr.rel (%p707_p4) target bundleno = 114 (0x72), region = 32 }
  0x4f   : > { %207 = sbr.rel (!%p1385_p3) target bundleno = 114 (0x72), region = 36  ;;  %s208_s14 = sand.u32 (%p1385_p3), 1, %s1054_s20  }
  0x50   : > { %s709_s15 = sshll.u32 (%p1385_p3), %s1058_s21, 1  ;;  %s708_s16 = sshll.u32 (%p1385_p3), %s208_s14, 5 }
  0x51   : > { %s214_s17 = ssub.s32 (%p1385_p3), 3, %s709_s15  ;;  %s1233_s8 = scalar_lea.sflag (%p1385_p3), [#allocation3], %s208_s14 }
  0x52   : > { %p215_p5 = scmp.lt.s32.totalorder (%p1385_p3), %s214_s17, 2  ;;  %s212_s11 = scalar_lea.vmem (%p1385_p3), [#allocation2], %s708_s16 }
  0x56   : > { %s1398_s17 = smov (!%p215_p5, %s214_s17), 2 }
  0x57   : > { %s1230_s10 = sshll.u32 %s1398_s17, 8 }
  0x58   : > { %s220_s12 = ssub.s32 512, %s1230_s10 }
  0x59   : > { %221 = vsyncadd %s1233_s8, %s220_s12  ;;  %p712_p2 = scmp.ne.s32.totalorder %s1230_s10, 0  ;;  %s759_s28 = sshll.u32 %s1058_s21, 9 }
  0x5a   : > { %s1241_s26 = scalar_lea.hbm %s1369_s0, %s759_s28  ;;  %s227_s9 = sshll.u32 %s212_s11, 4  ;;  %s1243_s9 = int_to_ptr.vmem [resolvable:$true] %s227_s9 }
  0x5b   : > { %s960_s27 = scalar_lea.hbm %s1241_s26, %s1230_s10  ;;  %s964_s15 = scalar_lea.hbm %s1369_s0, 768 }
  0x5c   : > { %p961_p6 = scmp.ne.s32.totalorder %s1241_s26, %s960_s27  ;;  %p965_p13 = scmp.lt.u32.totalorder %s1241_s26, %s1369_s0 }
  0x5d   : > { %p966_p0 = scmp.lt.u32.totalorder %s964_s15, %s960_s27  ;;  %p968_p8 = scmp.lt.u32.totalorder %s960_s27, %s1241_s26 }
  0x5e   : > { %p962_p11 = pnand %p961_p6, %p712_p2 }
  0x5f   : > { %p967_p7 = por %p966_p0, %p965_p13 }
  0x60   : > { %p963_p12 = pneg %p962_p11 }
  0x61   : > { %p969_p9 = por %p968_p8, %p967_p7 }
  0x63   : > { %p970_p10 = pnand %p969_p9, %p963_p12 }
  0x65   : > { %973 = shalt.err (!%p970_p10)
}
  0x66   : > { %s974_s12 = scalar_lea.vmem %s1243_s9, %s1230_s10  ;;  %s1064_s11 = smov [#allocation2]  }
  0x67   : > { %p975_p1 = scmp.ne.s32.totalorder %s1243_s9, %s974_s12  ;;  %s978_s28 = sshll.u32 %s1064_s11, 4  ;;  %s979_s28 = int_to_ptr.vmem [resolvable:$false] %s978_s28 }
  0x68   : > { %s980_s23 = scalar_lea.vmem %s979_s28, 1024  ;;  %p981_p6 = scmp.lt.s32.totalorder %s1243_s9, %s979_s28 }
  0x69   : > { %p976_p3 = pnand %p975_p1, %p712_p2  ;;  %p982_p11 = scmp.lt.s32.totalorder %s980_s23, %s974_s12 }
  0x6b   : > { %p977_p5 = pneg %p976_p3  ;;  %p983_p13 = por %p982_p11, %p981_p6 }
  0x6d   : > { %p984_p0 = pnand %p983_p13, %p977_p5 }
  0x6f   : > { %987 = shalt.err (!%p984_p0)
}
  0x70   : > { %s1065_s25 = smov 256   ;;  %s1066_s27 = smov 16  }
  0x71   : > { %233 = dma.hbm_to_vmem [thread:$0]  (%p712_p2), %s1241_s26, %s1230_s10, %s1243_s9, %s1233_s8, %s1065_s25, %s1065_s25, %s1066_s27  }
  0x72 PF: > { %p1386_p12 = scmp.ne.s32.totalorder %s1383_s7, 0 }
  0x73   : > { %s1273_s13 = sand.u32 (!%p1386_p12), 1, %s1050_s19   ;;  %p1387_p7 = scmp.ne.s32.totalorder (!%p1386_p12), %s1380_s29, 0 }
  0x74   : > { %239 = sbr.rel (%p1386_p12) target bundleno = 628 (0x274), region = 40  ;;  %s718_s14 = sshll.u32 (!%p1386_p12), %s1273_s13, 5 }
  0x75   : > { %s242_s15 = scalar_lea.sflag (!%p1386_p12), [#allocation3], %s1273_s13  ;;  %s1277_s16 = scalar_lea.vmem (!%p1386_p12), [#allocation2], %s718_s14 }
  0x7b   : > { %1033 = dma.done.wait (%p1387_p7), %s242_s15, 512  }
  0x7c   : > { %1035 = vsyncadd (%p1387_p7), %s242_s15, 4294966784  ;;  %p1388_p2 = scmp.eq.s32.totalorder %s1123_s22, 0 }
  0x7e   : > { %1037 = dma.done.wait (%p1388_p2), [#allocation6], 3072   ;;  %p1389_p8 = pmov %p1388_p2 }
  0x7f   : > { %v1067_v0 = vmov 0.0   ;;  %v880_v1 = vld [vmem:[#allocation5 + $0x40] sm:$0xff]   ;;  %v882_v3 = vld [vmem:[#allocation5 + $0x48] sm:$0xff]   ;;  %v884_v5 = vld [vmem:[#allocation5 + $0x50] sm:$0xff]   ;;  %vm1068_vm0 = vmmov 0   ;;  %s721_s10 = sshll.u32 %s1273_s13, 4 }
  0x80   : > { %1039 = vsyncadd (%p1389_p8), [#allocation6], 4294964224  ;;  %792 = vmatprep.subr.bf16.mxu1 %v1067_v0  ;;  %v881_v2 = vld [vmem:[#allocation5] sm:$0xff]   ;;  %761 = vmatprep.subr.bf16.mxu0 %v880_v1  ;;  %v883_v4 = vld [vmem:[#allocation5 + $0x8] sm:$0xff]   ;;  %s279_s9 = scalar_lea.vmem [#allocation8], %s721_s10  ;;  %s592_s17 = scalar_lea.sflag [#allocation4], %s1273_s13 }
  0x81   : > { %762 = vmatpush3.bf16.msra.mxu0 %v881_v2  ;;  %v885_v6 = vld [vmem:[#allocation5 + $0x10] sm:$0xff]   ;;  %v886_v7 = vld [vmem:[#allocation5 + $0x58] sm:$0xff]   ;;  %v888_v9 = vld [vmem:[#allocation5 + $0x60] sm:$0xff]   ;;  %808 = vmatprep.mubr.msk.bf16.mxu1 %vm1068_vm0, %v1067_v0  ;;  %p1390_p9 = scmp.ne.s32.totalorder %s1381_s30, 0 }
  0x82   : > { %763 = vmatprep.subr.bf16.mxu0 %v882_v3  ;;  %v887_v8 = vld [vmem:[#allocation5 + $0x18] sm:$0xff]   ;;  %v889_v10 = vld [vmem:[#allocation5 + $0x20] sm:$0xff]   ;;  %v890_v11 = vld [vmem:[#allocation5 + $0x68] sm:$0xff]   ;;  %s749_s12 = sshll.u32 (%p1390_p9), %s1123_s22, 1 }
  0x83   : > { %v293_v12 = vld [vmem:[%s1277_s16 + $0x8] sm:$0xff]  ;;  %v295_v13 = vld [vmem:[%s1277_s16 + $0x18] sm:$0xff]  ;;  %v896_v16 = vld [vmem:[#allocation7] sm:$0xff]   ;;  %s600_s11 = ssub.s32 (%p1390_p9), 3, %s749_s12 }
  0x84   : > { %v891_v14 = vld [vmem:[#allocation5 + $0x28] sm:$0xff]   ;;  %v297_v15 = vpack.c.bf16 %v295_v13, %v293_v12  ;;  %v892_v17 = vld [vmem:[#allocation5 + $0x70] sm:$0xff]   ;;  %793 = vmatpush3.bf16.msra.mxu1 %v896_v16  ;;  %v894_v20 = vld [vmem:[#allocation5 + $0x78] sm:$0xff]   ;;  %p601_p10 = scmp.lt.s32.totalorder (%p1390_p9), %s600_s11, 2 }
  0x85   : > { %764 = vmatpush3.bf16.msra.mxu0 %v883_v4  ;;  %v897_v18 = vld [vmem:[#allocation7 + $0x8] sm:$0xff]   ;;  %794 = vmatprep.subr.bf16.mxu1 %v1067_v0  ;;  %v893_v19 = vld [vmem:[#allocation5 + $0x30] sm:$0xff]   ;;  %v895_v22 = vld [vmem:[#allocation5 + $0x38] sm:$0xff]  }
  0x86   : > { %765 = vmatprep.subr.bf16.mxu0 %v884_v5  ;;  %465 = vmatprep.mubr.bf16.mxu0 %v297_v15  ;;  %v898_v21 = vld [vmem:[#allocation7 + $0x10] sm:$0xff]   ;;  %v292_v23 = vld [vmem:[%s1277_s16] sm:$0xff]  ;;  %v899_v25 = vld [vmem:[#allocation7 + $0x18] sm:$0xff]  }
  0x87   : > { %v294_v24 = vld [vmem:[%s1277_s16 + $0x10] sm:$0xff]  ;;  %v900_v27 = vld [vmem:[#allocation7 + $0x20] sm:$0xff]   ;;  %v901_v28 = vld [vmem:[#allocation7 + $0x28] sm:$0xff]  }
  0x88   : > { %795 = vmatpush3.bf16.msra.mxu1 %v897_v18  ;;  %v296_v26 = vpack.c.bf16 %v294_v24, %v292_v23  ;;  %v902_v29 = vld [vmem:[#allocation7 + $0x30] sm:$0xff]   ;;  %v903_v30 = vld [vmem:[#allocation7 + $0x38] sm:$0xff]   ;;  %v722_v32 = vld [vmem:[%s1371_s2] ss:$0 sm:$0xff] }
  0x89   : > { %766 = vmatpush3.bf16.msra.mxu0 %v885_v6  ;;  %796 = vmatprep.subr.bf16.mxu1 %v1067_v0  ;;  %v739_v43 = vld [vmem:[%s1373_s4] ss:$0 sm:$0xff] }
  0x8a   : > { %767 = vmatprep.subr.bf16.mxu0 %v886_v7 }
  0x8c   : > { %797 = vmatpush3.bf16.msra.mxu1 %v898_v21 }
  0x8d   : > { %768 = vmatpush3.bf16.msra.mxu0 %v887_v8  ;;  %798 = vmatprep.subr.bf16.mxu1 %v1067_v0 }
  0x8e   : > { %769 = vmatprep.subr.bf16.mxu0 %v888_v9 }
  0x90   : > { %799 = vmatpush3.bf16.msra.mxu1 %v899_v25 }
  0x91   : > { %770 = vmatpush3.bf16.msra.mxu0 %v889_v10  ;;  %800 = vmatprep.subr.bf16.mxu1 %v1067_v0 }
  0x92   : > { %771 = vmatprep.subr.bf16.mxu0 %v890_v11 }
  0x94   : > { %801 = vmatpush3.bf16.msra.mxu1 %v900_v27 }
  0x95   : > { %772 = vmatpush3.bf16.msra.mxu0 %v891_v14  ;;  %802 = vmatprep.subr.bf16.mxu1 %v1067_v0 }
  0x96   : > { %773 = vmatprep.subr.bf16.mxu0 %v892_v17 }
  0x98   : > { %803 = vmatpush3.bf16.msra.mxu1 %v901_v28 }
  0x99   : > { %774 = vmatpush3.bf16.msra.mxu0 %v893_v19  ;;  %804 = vmatprep.subr.bf16.mxu1 %v1067_v0 }
  0x9a   : > { %775 = vmatprep.subr.bf16.mxu0 %v894_v20 }
  0x9c   : > { %805 = vmatpush3.bf16.msra.mxu1 %v902_v29 }
  0x9d   : > { %776 = vmatpush3.bf16.msra.mxu0 %v895_v22  ;;  %806 = vmatprep.subr.bf16.mxu1 %v1067_v0 }
  0xa0   : > { %466 = vmatmul.mubr.bf16.vlgmr.msra.gmra.mrb[0].mxu0 %v296_v26  ;;  %807 = vmatpush3.bf16.msra.mxu1 %v903_v30 }
 0x173   : > { %v777_v31 = vpop.f32.mrb[0].mxu0 }
 0x174   : > { %v778_v33 = vpop.f32.mrb[1].mxu0 }
 0x175   : > { %v779_v34 = vadd.f32 %v778_v33, %v777_v31  ;;  %v780_v35 = vpop.f32.mrb[2].mxu0 }
 0x176   : > { %v781_v36 = vpop.f32.mrb[3].mxu0 }
 0x177   : > { %v468_v37 = vadd.f32 %v779_v34, %v722_v32  ;;  %v782_v38 = vadd.f32 %v781_v36, %v780_v35 }
 0x179   : > { %v471_v39 = vadd.f32 %v782_v38, %v722_v32  ;;  %v474_v40 = vmax.f32 %v468_v37, 0.0 }
 0x17b   : > { %v475_v41 = vmax.f32 %v471_v39, 0.0 }
 0x17d   : > { %v476_v42 = vpack.c.bf16 %v475_v41, %v474_v40 }
 0x17f   : > { %809 = vmatmul.mubr.bf16.vlgmr.msra.gmra.mrb[0].mxu1 %v476_v42 }
 0x251   : > { %598 = sbr.rel (!%p1390_p9) target bundleno = 628 (0x274), region = 56 }
 0x252   : > { %v582_v44 = vpop.f32.mrb[0].mxu1 }
 0x253   : > { %v583_v45 = vadd.f32 %v739_v43, %v582_v44  ;;  %v810_v46 = vpop.f32.mrb[1].mxu1 }
 0x254   : > { %v585_v47 = vpop.f32.mrb[2].mxu1 }
 0x255   : > { %589 = vst [vmem:[%s279_s9] sm:$0xff] %v583_v45  ;;  %v586_v48 = vadd.f32 %v739_v43, %v585_v47  ;;  %v811_v49 = vpop.f32.mrb[3].mxu1 }
 0x257   : > { %590 = vst [vmem:[%s279_s9 + $0x8] sm:$0xff] %v586_v48 }
 0x258   : > { %s1400_s11 = smov (!%p601_p10, %s600_s11), 2 }
 0x259   : > { %s1311_s28 = sshll.u32 %s1400_s11, 7 }
 0x25a   : > { %s605_s23 = ssub.s32 256, %s1311_s28 }
 0x25b   : > { %606 = vsyncadd %s592_s17, %s605_s23  ;;  %p751_p1 = scmp.ne.s32.totalorder %s1311_s28, 0  ;;  %s760_s25 = sshll.u32 %s1123_s22, 8 }
 0x25c   : > { %s1321_s14 = scalar_lea.hbm %s1374_s5, %s760_s25  ;;  %s611_s15 = sshll.u32 %s279_s9, 4  ;;  %s1323_s15 = int_to_ptr.vmem [resolvable:$true] %s611_s15 }
 0x25d   : > { %s988_s16 = scalar_lea.vmem %s1323_s15, %s1311_s28  ;;  %s1069_s29 = smov [#allocation8]  }
 0x25e   : > { %p989_p3 = scmp.ne.s32.totalorder %s1323_s15, %s988_s16  ;;  %s992_s7 = sshll.u32 %s1069_s29, 4  ;;  %s993_s7 = int_to_ptr.vmem [resolvable:$false] %s992_s7 }
 0x25f   : > { %s994_s22 = scalar_lea.vmem %s993_s7, 512  ;;  %p995_p11 = scmp.lt.s32.totalorder %s1323_s15, %s993_s7 }
 0x260   : > { %p990_p5 = pnand %p989_p3, %p751_p1  ;;  %p996_p13 = scmp.lt.s32.totalorder %s994_s22, %s988_s16 }
 0x262   : > { %p991_p6 = pneg %p990_p5  ;;  %p997_p0 = por %p996_p13, %p995_p11 }
 0x264   : > { %p998_p12 = pnand %p997_p0, %p991_p6 }
 0x266   : > { %1001 = shalt.err (!%p998_p12)
}
 0x267   : > { %s1002_s10 = scalar_lea.hbm %s1321_s14, %s1311_s28  ;;  %s1006_s9 = scalar_lea.hbm %s1374_s5, 384 }
 0x268   : > { %p1003_p7 = scmp.ne.s32.totalorder %s1321_s14, %s1002_s10  ;;  %p1007_p9 = scmp.lt.u32.totalorder %s1321_s14, %s1374_s5 }
 0x269   : > { %p1008_p10 = scmp.lt.u32.totalorder %s1006_s9, %s1002_s10  ;;  %p1010_p5 = scmp.lt.u32.totalorder %s1002_s10, %s1321_s14 }
 0x26a   : > { %p1004_p2 = pnand %p1003_p7, %p751_p1 }
 0x26b   : > { %p1009_p3 = por %p1008_p10, %p1007_p9 }
 0x26c   : > { %p1005_p8 = pneg %p1004_p2 }
 0x26d   : > { %p1011_p6 = por %p1010_p5, %p1009_p3 }
 0x26f   : > { %p1012_p11 = pnand %p1011_p6, %p1005_p8 }
 0x271   : > { %1015 = shalt.err (!%p1012_p11)
}
 0x272   : > { %s1070_s23 = smov 128   ;;  %s1071_s25 = smov 8  }
 0x273   : > { %617 = dma.vmem_to_hbm [thread:$0]  (%p751_p1), %s1323_s15, %s1311_s28, %s1321_s14, %s592_s17, %s1070_s23, %s1070_s23, %s1071_s25  }
 0x274 PF: > { %s626_s30 = sand.u32 1, %s1046_s18   ;;  %p1391_p13 = scmp.ne.s32.totalorder %s1382_s6, 0 }
 0x275   : > { %s627_s27 = scalar_lea.sflag [#allocation4], %s626_s30 }
 0x276   : > { %p830_p0 = pnand %p707_p4, %p1391_p13 }
 0x278   : > { %1041 = dma.done.wait (!%p830_p0), %s627_s27, 256  }
 0x279   : > { %1043 = vsyncadd (!%p830_p0), %s627_s27, 4294967040  ;;  %s1392_s16 = sld [smem:[#allocation12_spill]]  ;;  %p19_p12 = scmp.ge.s32.totalorder %s1127_s24, 4  }
 0x27a   : > { %s1393_s18 = smov %s1050_s19  ;;  %s1394_s19 = smov %s1054_s20 }
 0x27b   : > { %s1396_s21 = smov %s1127_s24  ;;  %21 = sbr.rel (!%p19_p12) target bundleno = 6 (0x6), region = 93 }
 0x27f   : > { %s1395_s20 = smov %s1392_s16 }
 0x282   :  { %632 = vsyncpa [#allocation3], 1 }
 0x283   :  { %634 = vsyncpa [#allocation3 + $0x1], 1 }
 0x284   :  { %635 = vsyncpa [#allocation6], 1 }
 0x285   :  { %636 = vsyncpa [#allocation4], 1 }
 0x286   :  { %638 = vsyncpa [#allocation4 + $0x1], 1 }

</bundles_post_ra>
